<compile_context>
chip_gen: v5e
topology: v5e:2x2
jax: 0.10.0
libtpu: 0.0.40
codegen_flags: <defaults>
</compile_context>

<pallas_src>
import functools

import jax
import jax.numpy as jnp
from jax.experimental import pallas as pl
from jax.experimental.pallas import tpu as pltpu


# --------------------------- Kernel 1: fused projection ----------------------
def _proj_kernel(x_ref, w_ref, h_ref, aux_ref, *, hf):
    """[h | res | el | er] = x @ [W_fc | W_res | W_el | W_er] (one MXU launch)."""
    x = x_ref[...]                                              # (T, Din) f32
    w = w_ref[...]                                              # (Din, 2HF+2H) f32
    hw = jnp.dot(x, w, preferred_element_type=jnp.float32)      # (T, 2HF+2H)
    h_ref[...] = hw[:, :hf].astype(h_ref.dtype)                 # (T, HF) bf16
    aux_ref[...] = hw[:, hf:]                                   # (T, HF+2H) f32: [res|el|er]


# ---------------- Kernel 2: edge-softmax attention + aggregation -------------
def _attn_kernel(aux_ref, elt_ref, h_ref, adjb_ref, bias_ref, out_ref, acc_ref,
                 *, num_heads, out_feats, neg_slope):
    hf = num_heads * out_feats
    aux = aux_ref[...]                                          # (T, HF+2H) f32 (dst rows)
    res = aux[:, :hf]                                           # residual projection
    el_t = elt_ref[...]                                         # (H, N) f32 (src scores)
    adjb = adjb_ref[...].astype(jnp.float32)                    # (T, N) additive mask 0/-1e30

    for hd in range(num_heads):
        lo = hd * out_feats
        er_col = aux[:, hf + num_heads + hd:hf + num_heads + hd + 1]   # (T, 1)
        e = er_col + el_t[hd:hd + 1, :]                         # (T, N)
        e = jnp.where(e > 0, e, neg_slope * e)                  # LeakyReLU
        e = e + adjb                                            # masked edges -> ~-1e30
        m = jnp.max(e, axis=-1, keepdims=True)
        p = jnp.exp(e - m)                                      # masked entries underflow to 0
        denom = jnp.sum(p, axis=-1, keepdims=True)              # >= 1 (self-loop guaranteed)
        # Unnormalized aggregation on the MXU in bf16; normalize afterwards
        # ((T,F) scale instead of (T,N) multiplies), reciprocal on the EUP.
        h_hd = h_ref[:, lo:lo + out_feats]                      # (N, F) bf16
        agg = jnp.dot(p.astype(h_hd.dtype), h_hd,
                      preferred_element_type=jnp.float32)       # (T, F)
        acc_ref[:, lo:lo + out_feats] = agg * pl.reciprocal(denom, approx=True)

    # Single lane-dense store of the full (T, H*F) tile.
    out_ref[...] = (acc_ref[...] + res + bias_ref[...]).astype(out_ref.dtype)


# --------------------------------- wrapper -----------------------------------
def gat_layer_forward(feats, adj, params, *, num_heads, out_feats,
                      neg_slope=0.2, agg_modes="flatten", tile_rows=None):
    """feats: (N, in_feats) f32; adj: (N, N) dense adjacency mask (>0 == edge)."""
    n, din = feats.shape
    hf = num_heads * out_feats
    f32 = jnp.float32

    # ---- host-side (plain JAX) parameter preprocessing ----
    w_fc = params["w_fc"].astype(f32)                           # (Din, HF)
    w_res = params["w_res"].astype(f32)                         # (Din, HF)
    attn_l = params["attn_l"].astype(f32)                       # (H, F)
    attn_r = params["attn_r"].astype(f32)                       # (H, F)
    # Fold the per-head attention dot products into the projection matmul:
    #   el = (x @ W_fc) . attn_l  ==  x @ W_el  with  W_el[d,h] = sum_f W_fc[d,hF+f] attn_l[h,f]
    w_fc3 = w_fc.reshape(din, num_heads, out_feats)
    w_el = jnp.einsum("dhf,hf->dh", w_fc3, attn_l)              # (Din, H)
    w_er = jnp.einsum("dhf,hf->dh", w_fc3, attn_r)              # (Din, H)
    w_cat = jnp.concatenate([w_fc, w_res, w_el, w_er], axis=1)  # (Din, 2HF+2H)

    # Additive adjacency mask in bf16 (dominant DMA stream at scale).
    adj_bias = jnp.where(adj > 0, 0.0, -1e30).astype(jnp.bfloat16)  # (N, N)
    bias = params["bias"].reshape(1, hf).astype(f32)

    if tile_rows is None:
        # Multiple of 16 (bf16 sublane packing); sized so 2x(TILE,N) adj buffers
        # + resident h fit comfortably under v7x's 64 MiB VMEM for realistic N.
        tile_rows = n if n <= 512 else 512
    tile_rows = min(tile_rows, n)
    grid = (pl.cdiv(n, tile_rows),)
    cparams = pltpu.CompilerParams(
        dimension_semantics=("parallel",),            # 2nd TC on v7x
        vmem_limit_bytes=64 * 1024 * 1024)

    # ---- kernel 1: fused projection over node-row tiles ----
    h_bf16, aux = pl.pallas_call(
        functools.partial(_proj_kernel, hf=hf),
        out_shape=(jax.ShapeDtypeStruct((n, hf), jnp.bfloat16),
                   jax.ShapeDtypeStruct((n, hf + 2 * num_heads), f32)),
        grid=grid,
        in_specs=[pl.BlockSpec((tile_rows, din), lambda i: (i, 0)),
                  pl.BlockSpec((din, 2 * hf + 2 * num_heads), lambda i: (0, 0))],
        out_specs=(pl.BlockSpec((tile_rows, hf), lambda i: (i, 0)),
                   pl.BlockSpec((tile_rows, hf + 2 * num_heads), lambda i: (i, 0))),
        compiler_params=cparams,
    )(feats.astype(f32), w_cat)

    # Tiny glue: src-side scores laid out (H, N) so they broadcast along lanes.
    el_t = jnp.transpose(aux[:, hf:hf + num_heads])             # (H, N)

    # ---- kernel 2: attention + aggregation over dst-row tiles ----
    out = pl.pallas_call(
        functools.partial(_attn_kernel, num_heads=num_heads,
                          out_feats=out_feats, neg_slope=neg_slope),
        out_shape=jax.ShapeDtypeStruct((n, hf), feats.dtype),
        grid=grid,
        in_specs=[pl.BlockSpec((tile_rows, hf + 2 * num_heads), lambda i: (i, 0)),
                  pl.BlockSpec((num_heads, n), lambda i: (0, 0)),   # resident
                  pl.BlockSpec((n, hf), lambda i: (0, 0)),          # resident (bf16)
                  pl.BlockSpec((tile_rows, n), lambda i: (i, 0)),   # pipelined adj tile
                  pl.BlockSpec((1, hf), lambda i: (0, 0))],
        out_specs=pl.BlockSpec((tile_rows, hf), lambda i: (i, 0)),
        scratch_shapes=[pltpu.VMEM((tile_rows, hf), jnp.float32)],
        compiler_params=cparams,
    )(aux, el_t, h_bf16, adj_bias, bias)

    if agg_modes == "flatten":
        return out                                              # (N, H*F)
    return out.reshape(n, num_heads, out_feats).mean(axis=1)    # 'mean'


# ------------------------------ pure-JAX reference ---------------------------
def _reference_forward(feats, adj, params, *, num_heads, out_feats, neg_slope=0.2):
    n = feats.shape[0]
    h = feats @ params["w_fc"]
    h3 = h.reshape(n, num_heads, out_feats)
    el = (h3 * params["attn_l"][None]).sum(-1)                  # (N, H)
    er = (h3 * params["attn_r"][None]).sum(-1)                  # (N, H)
    e = er[:, None, :] + el[None, :, :]                         # (dst, src, H)
    e = jnp.where(e > 0, e, neg_slope * e)
    mask = (adj > 0)[:, :, None]
    e = jnp.where(mask, e, -1e30)
    p = jnp.where(mask, jnp.exp(e - e.max(axis=1, keepdims=True)), 0.0)
    a = p / p.sum(axis=1, keepdims=True)
    rst = jnp.einsum("dsh,shf->dhf", a, h3)
    rst = rst + (feats @ params["w_res"]).reshape(n, num_heads, out_feats)
    rst = rst + params["bias"].reshape(1, num_heads, out_feats)
    return rst.reshape(n, num_heads * out_feats)


if __name__ == "__main__":
    N = 32            # graph nodes
    IN_FEATS = 8
    OUT_FEATS = 8
    NUM_HEADS = 4
    ALPHA = 0.2       # LeakyReLU negative slope
    # feat_drop / attn_drop: identity in eval mode (deterministic forward).

    key = jax.random.PRNGKey(0)
    k_x, k_fc, k_l, k_r, k_res, k_b = jax.random.split(key, 6)

    feats = jax.random.normal(k_x, (N, IN_FEATS), dtype=jnp.float32)
    params = {
        "w_fc": jax.random.normal(k_fc, (IN_FEATS, NUM_HEADS * OUT_FEATS),
                                  dtype=jnp.float32) * 0.3,
        "attn_l": jax.random.normal(k_l, (NUM_HEADS, OUT_FEATS),
                                    dtype=jnp.float32) * 0.3,
        "attn_r": jax.random.normal(k_r, (NUM_HEADS, OUT_FEATS),
                                    dtype=jnp.float32) * 0.3,
        "w_res": jax.random.normal(k_res, (IN_FEATS, NUM_HEADS * OUT_FEATS),
                                   dtype=jnp.float32) * 0.3,
        "bias": jax.random.normal(k_b, (NUM_HEADS * OUT_FEATS,),
                                  dtype=jnp.float32) * 0.1,
    }

    # Deterministic ring graph with self-loops (no zero in-degree node).
    idx = jnp.arange(N)
    adj = (jnp.zeros((N, N), dtype=jnp.float32)
           .at[idx, idx].set(1.0)
           .at[idx, (idx - 1) % N].set(1.0)
           .at[idx, (idx + 1) % N].set(1.0))

    out = gat_layer_forward(feats, adj, params, num_heads=NUM_HEADS,
                            out_feats=OUT_FEATS, neg_slope=ALPHA,
                            agg_modes="flatten", tile_rows=16)
    out = jax.block_until_ready(out)

    ref = _reference_forward(feats, adj, params, num_heads=NUM_HEADS,
                             out_feats=OUT_FEATS, neg_slope=ALPHA)
    assert out.shape == (N, NUM_HEADS * OUT_FEATS)
    assert bool(jnp.all(jnp.isfinite(out)))
    # Tolerance accounts for the intentional bf16 operands on the aggregation
    # matmul + approx reciprocal; structural math is exact vs the f32 reference.
    assert jnp.allclose(out, ref, atol=2e-2, rtol=2e-2)

    print("KERNEL_OK")
</pallas_src>

<mosaic_0001>
module attributes {stable_mosaic.version = 11 : i64} {
  func.func @_proj_kernel(%arg0: i32, %arg1: memref<16x8xf32, #tpu.memory_space<vmem>>, %arg2: memref<8x72xf32, #tpu.memory_space<vmem>>, %arg3: memref<16x32xbf16, #tpu.memory_space<vmem>>, %arg4: memref<16x40xf32, #tpu.memory_space<vmem>>) attributes {dimension_semantics = [#tpu.dimension_semantics<parallel>], iteration_bounds = array<i64: 2>, scalar_prefetch = 0 : i64, scratch_operands = 0 : i64, tpu.core_type = #tpu.core_type<tc>, window_params = [{transform_indices = @transform_0, window_bounds = array<i64: 16, 8>}, {pipeline_mode = #tpu.pipeline_mode<synchronous>, transform_indices = @transform_1, window_bounds = array<i64: 8, 72>}, {transform_indices = @transform_2, window_bounds = array<i64: 16, 32>}, {transform_indices = @transform_3, window_bounds = array<i64: 16, 40>}]} {
    %c0 = arith.constant 0 : index
    %c0_0 = arith.constant 0 : index
    %0 = vector.load %arg1[%c0, %c0_0] : memref<16x8xf32, #tpu.memory_space<vmem>>, vector<16x8xf32>
    %c0_1 = arith.constant 0 : index
    %c0_2 = arith.constant 0 : index
    %1 = vector.load %arg2[%c0_1, %c0_2] : memref<8x72xf32, #tpu.memory_space<vmem>>, vector<8x72xf32>
    %cst = arith.constant dense<0.000000e+00> : vector<16x72xf32>
    %2 = tpu.matmul %0, %1, %cst {dimension_numbers = #tpu.dot_dimension_numbers<[1], [0], [0], [1], [0, 0, 1, 1], [], []>} : vector<16x8xf32>, vector<8x72xf32>, vector<16x72xf32> -> vector<16x72xf32>
    %3 = vector.extract_strided_slice %2 {offsets = [0, 0], sizes = [16, 32], strides = [1, 1]} : vector<16x72xf32> to vector<16x32xf32>
    %4 = arith.truncf %3 : vector<16x32xf32> to vector<16x32xbf16>
    %c0_3 = arith.constant 0 : index
    %c0_4 = arith.constant 0 : index
    %5 = vector.load %arg3[%c0_3, %c0_4] : memref<16x32xbf16, #tpu.memory_space<vmem>>, vector<16x32xbf16>
    tpu.vector_store %arg3[%c0_3, %c0_4], %4 {strides = array<i32>} : memref<16x32xbf16, #tpu.memory_space<vmem>>, vector<16x32xbf16>,
    %6 = vector.extract_strided_slice %2 {offsets = [0, 32], sizes = [16, 40], strides = [1, 1]} : vector<16x72xf32> to vector<16x40xf32>
    %c0_5 = arith.constant 0 : index
    %c0_6 = arith.constant 0 : index
    %7 = vector.load %arg4[%c0_5, %c0_6] : memref<16x40xf32, #tpu.memory_space<vmem>>, vector<16x40xf32>
    tpu.vector_store %arg4[%c0_5, %c0_6], %6 {strides = array<i32>} : memref<16x40xf32, #tpu.memory_space<vmem>>, vector<16x40xf32>,
    return
  }
  func.func @transform_0(%arg0: i32) -> (i32, i32) {
    %c0_i32 = arith.constant 0 : i32
    %c0_i32_0 = arith.constant 0 : i32
    return %arg0, %c0_i32 : i32, i32
  }
  func.func @transform_1(%arg0: i32) -> (i32, i32) {
    %c0_i32 = arith.constant 0 : i32
    %c0_i32_0 = arith.constant 0 : i32
    %c0_i32_1 = arith.constant 0 : i32
    return %c0_i32, %c0_i32_0 : i32, i32
  }
  func.func @transform_2(%arg0: i32) -> (i32, i32) {
    %c0_i32 = arith.constant 0 : i32
    %c0_i32_0 = arith.constant 0 : i32
    return %arg0, %c0_i32 : i32, i32
  }
  func.func @transform_3(%arg0: i32) -> (i32, i32) {
    %c0_i32 = arith.constant 0 : i32
    %c0_i32_0 = arith.constant 0 : i32
    return %arg0, %c0_i32 : i32, i32
  }
}

</mosaic_0001>

<bundles_post_ra>
// kernel: tpu_custom_call.1
= control target key start
LH: loop header
LB: loop body
LE: loop exit
PB: predicated region body
PF: predicated region fallthrough
CT: control target
= control target key end

     0   :  { %9 = vsyncpa [#allocation3], 0  ;;  %s664_s0 = inlined_call_operand.vmem [shape: f32[32,8], index: 0, kind: input, shape index: {}]   ;;  %s665_s1 = inlined_call_operand.vmem [shape: f32[8,72], index: 1, kind: input, shape index: {}]   ;;  %s666_s2 = inlined_call_operand.hbm [shape: bf16[32,32], index: 2, kind: output, shape index: {0}]   ;;  %s667_s3 = inlined_call_operand.hbm [shape: f32[32,40], index: 3, kind: output, shape index: {1}]  }
   0x1   :  { %11 = vsyncpa [#allocation3 + $0x1], 0 }
   0x2   :  { %12 = vsyncpa [#allocation5], 0 }
   0x3   :  { %14 = vsyncpa [#allocation5 + $0x1], 0  ;;  %s557_s12 = smov 0   ;;  %s559_s13 = smov 0  }
   0x4   :  { %s561_s14 = smov 0   ;;  %s563_s15 = smov 0  }
   0x5 LB: > { %s578_s16 = sadd.s32 4294967295, %s530_s15   ;;  %s366_s17 = sadd.s32 4294967294, %s530_s15   ;;  %s530_s15 = sphi %s563_s15, %s673_s15   ;;  %s526_s14 = sphi %s561_s14, %s672_s14   ;;  %s522_s13 = sphi %s559_s13, %s671_s13   ;;  %s518_s12 = sphi %s557_s12, %s670_s12  }
   0x6   : > { %s582_s18 = sadd.s32 1, %s530_s15   ;;  %s74_s19 = sadd.s32 1, %s526_s14 }
   0x7   : > { %s71_s20 = ssub.s32 %s530_s15, %s582_s18  ;;  %p84_p0 = scmp.ne.s32.totalorder %s526_s14, %s522_s13 }
   0x8   : > { %p72_p1 = scmp.eq.s32.totalorder %s71_s20, 0  ;;  %p85_p2 = scmp.eq.s32.totalorder %s578_s16, 1 }
   0x9   : > { %p90_p3 = scmp.ne.s32.totalorder %s522_s13, %s518_s12  ;;  %p91_p4 = scmp.eq.s32.totalorder %s366_s17, 1 }
   0xa   : > { %s593_s21 = scalar_select %p72_p1, %s526_s14, %s74_s19  }
   0xb   : > { %p595_p5 = por %p85_p2, %p84_p0  ;;  %p599_p6 = por %p91_p4, %p90_p3 }
   0xc   : > { %p369_p7 = scmp.ge.s32.totalorder %s530_s15, 1  ;;  %p147_p8 = scmp.lt.s32.totalorder %s530_s15, 3 }
   0xe   : > { %p148_p9 = pnand %p369_p7, %p147_p8 }
   0xf   : > { %s372_s26 = sshll.u32 (!%p148_p9), %s578_s16, 1  ;;  %s613_s4 = sand.u32 (!%p148_p9), 1, %s522_s13  }
  0x10   : > { %151 = sbr.rel (%p148_p9) target bundleno = 278 (0x116), region = 28  ;;  %p177_p10 = scmp.lt.s32.totalorder (!%p148_p9), %s372_s26, 3 }
  0x11   : > { %s370_s5 = sshll.u32 (!%p148_p9), %s613_s4, 3  ;;  %s384_s6 = sshll.u32 (!%p148_p9), %s578_s16, 3 }
  0x12   : > { %s250_s9 = scalar_lea.hbm (!%p148_p9), %s666_s2, %s384_s6  ;;  %s168_s10 = scalar_lea.vmem (!%p148_p9), [#allocation2], %s370_s5 }
  0x13   : > { %s251_s11 = sshll.u32 (!%p148_p9), %s168_s10, 4  ;;  %s253_s17 = sshll.u32 (!%p148_p9), %s250_s9, 4  ;;  %s252_s11 = int_to_ptr.vmem [resolvable:$true] %s251_s11  ;;  %s254_s17 = int_to_ptr.hbm [resolvable:$true] %s253_s17 }
  0x14   : > { %s532_s19 = smov (!%p148_p9), 96   ;;  %s234_s20 = scalar_lea.sflag (!%p148_p9), [#allocation3], %s613_s4 }
  0x15   : > { %v186_v0 = vld [vmem:[%s665_s1] sm:$0xff]  ;;  %s675_s26 = smov (!%p177_p10, %s372_s26), 3  ;;  %vm187_vm0 = vcmask 64512   ;;  %vm219_vm1 = vcmask 257024   ;;  %s450_s24 = sshra.s32 %s254_s17, 4  ;;  %s451_s24 = int_to_ptr.hbm [resolvable:$true] %s450_s24 }
  0x16   : > { %209 = vmatpush.msra.mxu0 %v186_v0  ;;  %386 = vmatpush.msra.mxu1 %v186_v0  ;;  %s373_s27 = sshll.u32 %s675_s26, 3  ;;  %s452_s25 = scalar_lea.hbm %s451_s24, 8 }
  0x17   : > { %s180_s30 = scalar_lea.vmem %s664_s0, %s373_s27  ;;  %p453_p11 = scmp.ne.s32.totalorder %s451_s24, %s452_s25 }
  0x18   : > { %v184_v1 = vld [vmem:[%s180_s30] sm:$0xff]  ;;  %v185_v2 = vld [vmem:[%s180_s30 + $0x8] sm:$0xff]  ;;  %s456_s28 = scalar_lea.hbm %s666_s2, 16  ;;  %p457_p0 = scmp.lt.s32.totalorder %s451_s24, %s666_s2 }
  0x19   : > { %374 = vmatmul.msk.f32.vlgmr.msra.gmra.mxu0 %vm187_vm0, %v184_v1  ;;  %375 = vmatmul.msk.f32.vlgmr.msra.gmra.mxu1 %vm187_vm0, %v185_v2  ;;  %p454_p12 = pnand %p453_p11, %p595_p5  ;;  %p458_p1 = scmp.lt.s32.totalorder %s456_s28, %s452_s25 }
  0x1b   : > { %p455_p13 = pneg %p454_p12  ;;  %p459_p2 = por %p458_p1, %p457_p0 }
  0x1d   : > { %p460_p3 = pnand %p459_p2, %p455_p13 }
  0x96   : > { %v211_v3 = vpop.f32.mrf.mxu0  ;;  %v214_v4 = vpop.f32.mrf.mxu1 }
  0x97   : > { %v217_v5 = vpack.c.bf16 %v211_v3, %v211_v3  ;;  %224 = vrot.lane.b32.xlu0 %v211_v3, %s532_s19  ;;  %v218_v6 = vpack.c.bf16 %v214_v4, %v214_v4 }
  0x99   : > { %220 = vst.msk [vmem:[%s168_s10] sm:$0xf] %vm219_vm1, %v217_v5 }
  0x9a   : > { %221 = vst.msk [vmem:[%s168_s10 + $0x4] sm:$0xf] %vm219_vm1, %v218_v6 }
  0x9b   : > { %463 = shalt.err (!%p460_p3)
}
  0x9c   : > { %s533_s5 = smov 64   ;;  %s534_s6 = smov 4   ;;  %vm230_vm2 = vcmask 326656  }
  0x9d   : > { %387 = dma.vmem_to_hbm [thread:$0]  (%p595_p5), %s252_s11, 128, %s254_s17, %s234_s20, %s533_s5, %s533_s5, %s534_s6  }
  0x9e   : > { %s371_s7 = sshll.u32 %s613_s4, 4  ;;  %s385_s8 = sshll.u32 %s578_s16, 4 }
  0x9f   : > { %226 = vrot.lane.b32.xlu0 %v214_v4, %s532_s19  ;;  %s267_s24 = scalar_lea.hbm %s667_s3, %s385_s8  ;;  %s175_s25 = scalar_lea.vmem [#allocation4], %s371_s7 }
  0xa0   : > { %s268_s26 = sshll.u32 %s175_s25, 4  ;;  %s270_s27 = sshll.u32 %s267_s24, 4  ;;  %s269_s26 = int_to_ptr.vmem [resolvable:$true] %s268_s26  ;;  %s271_s27 = int_to_ptr.hbm [resolvable:$true] %s270_s27 }
  0xa1   : > { %s239_s28 = scalar_lea.sflag [#allocation5], %s613_s4  ;;  %s478_s11 = sshra.s32 %s271_s27, 4  ;;  %s479_s11 = int_to_ptr.hbm [resolvable:$true] %s478_s11 }
  0xa2   : > { %s480_s17 = scalar_lea.hbm %s479_s11, 16  ;;  %s484_s20 = scalar_lea.hbm %s667_s3, 32 }
  0xa3   : > { %p481_p4 = scmp.ne.s32.totalorder %s479_s11, %s480_s17  ;;  %p485_p9 = scmp.lt.s32.totalorder %s479_s11, %s667_s3 }
  0xa4   : > { %p486_p10 = scmp.lt.s32.totalorder %s484_s20, %s480_s17 }
  0xa5   : > { %p482_p7 = pnand %p481_p4, %p595_p5 }
  0xa6   : > { %p487_p11 = por %p486_p10, %p485_p9 }
  0xa7   : > { %p483_p8 = pneg %p482_p7 }
  0xa9   : > { %p488_p12 = pnand %p487_p11, %p483_p8 }
 0x109   : > { %v225_v7 = vpop.permute.xlu0 %224 }
 0x10a   : > { %231 = vst.msk [vmem:[%s175_s25] sm:$0xff] %vm230_vm2, %v225_v7 }
 0x111   : > { %v227_v8 = vpop.permute.xlu0 %226 }
 0x112   : > { %232 = vst.msk [vmem:[%s175_s25 + $0x8] sm:$0xff] %vm230_vm2, %v227_v8 }
 0x113   : > { %491 = shalt.err (!%p488_p12)
}
 0x114   : > { %s535_s4 = smov 128   ;;  %s536_s5 = smov 8  }
 0x115   : > { %388 = dma.vmem_to_hbm [thread:$0]  (%p595_p5), %s269_s26, 256, %s271_s27, %s239_s28, %s535_s4, %s535_s4, %s536_s5  }
 0x116 PF: > { %p398_p13 = scmp.ge.s32.totalorder %s530_s15, 2  ;;  %s285_s6 = sand.u32 1, %s518_s12  }
 0x117   : > { %s286_s7 = scalar_lea.sflag [#allocation3], %s285_s6 }
 0x118   : > { %p392_p0 = pnand %p398_p13, %p599_p6 }
 0x11a   : > { %p393_p1 = pneg %p392_p0 }
 0x11c   : > { %509 = dma.done.wait (%p393_p1), %s286_s7, 128  }
 0x11d   : > { %511 = vsyncadd (%p393_p1), %s286_s7, 4294967168  ;;  %s296_s8 = scalar_lea.sflag [#allocation5], %s285_s6 }
 0x11e   : > { %513 = dma.done.wait (%p393_p1), %s296_s8, 256  }
 0x11f   : > { %515 = vsyncadd (%p393_p1), %s296_s8, 4294967040  ;;  %p17_p5 = scmp.ge.s32.totalorder %s582_s18, 4   ;;  %s670_s12 = smov %s522_s13 }
 0x120   : > { %s671_s13 = smov %s526_s14  ;;  %s672_s14 = smov %s593_s21 }
 0x121   : > { %s673_s15 = smov %s582_s18  ;;  %19 = sbr.rel (!%p17_p5) target bundleno = 5 (0x5), region = 80 }
 0x126   :  { %302 = vsyncpa [#allocation3], 1 }
 0x127   :  { %304 = vsyncpa [#allocation3 + $0x1], 1 }
 0x128   :  { %305 = vsyncpa [#allocation5], 1 }
 0x129   :  { %307 = vsyncpa [#allocation5 + $0x1], 1 }

</bundles_post_ra>
